<compile_context>
chip_gen: v7x
topology: tpu7x:2x2x1
jax: 0.10.0
libtpu: 0.0.40
codegen_flags: <defaults>
</compile_context>

<pallas_src>
import math

import jax
import jax.numpy as jnp
from jax.experimental import pallas as pl
from jax.experimental.pallas import tpu as pltpu

EXTRA_FLAG_LEN = 10
_VMEM_LIMIT = 32 * 1024 * 1024

# Output-tile caps for the fused expansion kernel.
_EXP_ROW_TILE = 256
_EXP_COL_TILE = 512
# Tile caps for the final matmul weight stream.
_MM_K_TILE = 1024
_MM_N_TILE = 512


# ------------------------------- helpers -----------------------------------

def _round_up(x, m):
    return (x + m - 1) // m * m


def _pick_tile(dim, align, cap):
    """Largest divisor of `dim` that is a multiple of `align` and <= cap.
    Falls back to the full dimension (always a legal block size)."""
    best = None
    t = align
    limit = min(dim, cap)
    while t <= limit:
        if dim % t == 0:
            best = t
        t += align
    return best if best is not None else dim


def _vmem_spec():
    return pl.BlockSpec(memory_space=pltpu.MemorySpace.VMEM)


# ----------------------- batched weight_nn / bias_nn ------------------------

def _mlp_kernel(x_ref, w1_ref, b1_ref, w2_ref, b2_ref, o_ref):
    # Linear -> Tanh -> Linear, for all expansion steps at once.
    h = jnp.tanh(
        jnp.dot(x_ref[...], w1_ref[...], preferred_element_type=jnp.float32)
        + b1_ref[...]
    )
    o_ref[...] = (
        jnp.dot(h, w2_ref[...], preferred_element_type=jnp.float32) + b2_ref[...]
    )


def mlp_forward(x, w1, b1, w2, b2):
    """Batched MLP over all expansion steps (hoisted out of the loops).
    Rows padded to 8 sublanes, output features padded to 128 lanes for a
    dense store path; padding is sliced off in glue."""
    rows, din = x.shape
    inner = w1.shape[1]
    dout = w2.shape[1]
    rp = _round_up(max(rows, 1), 8)
    dp = _round_up(dout, 128)
    xp = x if rp == rows else jnp.zeros((rp, din), jnp.float32).at[:rows].set(x)
    w2p = w2 if dp == dout else jnp.zeros((inner, dp), jnp.float32).at[:, :dout].set(w2)
    b2p = b2 if dp == dout else jnp.zeros((1, dp), jnp.float32).at[:, :dout].set(b2)
    out = pl.pallas_call(
        _mlp_kernel,
        out_shape=jax.ShapeDtypeStruct((rp, dp), jnp.float32),
        in_specs=[_vmem_spec()] * 5,
        out_specs=_vmem_spec(),
        compiler_params=pltpu.CompilerParams(vmem_limit_bytes=_VMEM_LIMIT),
    )(xp, w1, b1, w2p, b2p)
    return out[:rows, :dout]


# ------------------------- fused expansion kernel ---------------------------

def _fused_expand_kernel(m_ref, rrow_ref, rcol_ref, p_ref, b_ref, o_ref):
    # out[i, j] = m0[i // K, j // K] * P[i % K, j % K] + B[i % K, j % K]
    # Nearest-upsample via two 0/1 replication matmuls on the MXU (exact:
    # each output element is a single-term sum), then a fused VPU FMA.
    up_c = jnp.dot(m_ref[...], rcol_ref[...], preferred_element_type=jnp.float32)
    up = jnp.dot(rrow_ref[...], up_c, preferred_element_type=jnp.float32)
    o_ref[...] = up * p_ref[...] + b_ref[...]


def expand_matrix_all_steps(m0, kernels, biases, kernel_size):
    """Collapse the whole expansion chain into one Pallas call.

    Reference semantics per step t: m_t = Upsample_k(m_{t-1}) * tile(K_t) + b_t.
    Collapsed: m_n = Upsample_{K}(m_0) * tile(P) + tile(B), K = k**n, with
    P = kron(K_1, ..., K_n) and B_t = kron(B_{t-1}, K_t) + b_t (B_1 = b_1 * 1).
    """
    n = len(kernels)
    if n == 0:
        return m0
    k = kernel_size
    p_eff = kernels[0]
    b_eff = jnp.full((k, k), biases[0], jnp.float32)
    for t in range(1, n):
        p_eff = jnp.kron(p_eff, kernels[t])
        b_eff = jnp.kron(b_eff, kernels[t]) + biases[t]

    big_k = k ** n
    s0 = m0.shape[0]
    sf = s0 * big_k

    tr = _pick_tile(sf, 8, _EXP_ROW_TILE)
    tc = _pick_tile(sf, 128, _EXP_COL_TILE)
    grid = (sf // tr, sf // tc)

    # 0/1 replication matrices for the nearest upsample (small: sf x s0).
    rrow = (jnp.arange(sf)[:, None] // big_k
            == jnp.arange(s0)[None, :]).astype(jnp.float32)            # (sf, s0)
    rcol = (jnp.arange(s0)[:, None]
            == jnp.arange(sf)[None, :] // big_k).astype(jnp.float32)   # (s0, sf)

    # Map the (K, K) effective kernel/bias onto output tiles.
    if tr % big_k == 0 and tc % big_k == 0:
        # One output tile spans whole K-periods: pre-tile to tile size and
        # keep it resident (constant index_map -> DMA'd once).
        pt = jnp.tile(p_eff, (tr // big_k, tc // big_k))
        bt = jnp.tile(b_eff, (tr // big_k, tc // big_k))
        p_spec = pl.BlockSpec((tr, tc), lambda i, j: (0, 0))
        b_spec = pl.BlockSpec((tr, tc), lambda i, j: (0, 0))
    elif (big_k % tr == 0 and big_k % tc == 0
          and (tr % 8 == 0 or tr == big_k)
          and (tc % 128 == 0 or tc == big_k)):
        # Output tile is a sub-block of one K-period: modular index_map.
        pt, bt = p_eff, b_eff
        nr, nc = big_k // tr, big_k // tc
        p_spec = pl.BlockSpec((tr, tc), lambda i, j: (i % nr, j % nc))
        b_spec = pl.BlockSpec((tr, tc), lambda i, j: (i % nr, j % nc))
    else:
        # Always-legal fallback: fully pre-tiled P/B (extra HBM traffic only).
        pt = jnp.tile(p_eff, (s0, s0))
        bt = jnp.tile(b_eff, (s0, s0))
        p_spec = pl.BlockSpec((tr, tc), lambda i, j: (i, j))
        b_spec = pl.BlockSpec((tr, tc), lambda i, j: (i, j))

    return pl.pallas_call(
        _fused_expand_kernel,
        out_shape=jax.ShapeDtypeStruct((sf, sf), jnp.float32),
        grid=grid,
        in_specs=[
            pl.BlockSpec((s0, s0), lambda i, j: (0, 0)),   # m0 (tiny, resident)
            pl.BlockSpec((tr, s0), lambda i, j: (i, 0)),   # row replication
            pl.BlockSpec((s0, tc), lambda i, j: (0, j)),   # col replication
            p_spec,
            b_spec,
        ],
        out_specs=pl.BlockSpec((tr, tc), lambda i, j: (i, j)),
        compiler_params=pltpu.CompilerParams(
            dimension_semantics=("parallel", "parallel"),
            vmem_limit_bytes=_VMEM_LIMIT,
        ),
    )(m0, rrow, rcol, pt, bt)


# ------------------------- tiled final x @ W + b ----------------------------

def _matmul_bias_kernel(x_ref, w_ref, b_ref, o_ref, acc_ref):
    kk = pl.program_id(1)

    @pl.when(kk == 0)
    def _():
        acc_ref[...] = jnp.zeros_like(acc_ref)

    acc_ref[...] += jnp.dot(x_ref[...], w_ref[...],
                            preferred_element_type=jnp.float32)

    @pl.when(kk == pl.num_programs(1) - 1)
    def _():
        o_ref[...] = (acc_ref[...] + b_ref[...]).astype(o_ref.dtype)


def matmul_bias(x, w, b):
    """x @ W + b.  The reference bmm uses batch-identical weights so it
    collapses to one matmul; the weight stream (K x N tiles) is the
    bandwidth bottleneck and is software-pipelined by the grid."""
    bsz, kdim = x.shape
    ndim = w.shape[1]
    tk = _pick_tile(kdim, 128, _MM_K_TILE)
    tn = _pick_tile(ndim, 128, _MM_N_TILE)
    grid = (ndim // tn, kdim // tk)
    return pl.pallas_call(
        _matmul_bias_kernel,
        out_shape=jax.ShapeDtypeStruct((bsz, ndim), jnp.float32),
        grid=grid,
        in_specs=[
            pl.BlockSpec((bsz, tk), lambda j, kk: (0, kk)),
            pl.BlockSpec((tk, tn), lambda j, kk: (kk, j)),
            pl.BlockSpec((1, tn), lambda j, kk: (0, j)),
        ],
        out_specs=pl.BlockSpec((bsz, tn), lambda j, kk: (0, j)),
        scratch_shapes=[pltpu.VMEM((bsz, tn), jnp.float32)],
        compiler_params=pltpu.CompilerParams(
            dimension_semantics=("parallel", "arbitrary"),
            vmem_limit_bytes=_VMEM_LIMIT,
        ),
    )(x, w, b)


# ------------------------------ plain-JAX glue ------------------------------

def pos_enc_index(index, d_model):
    # TODO(synk): PosEncIndex class is not provided in the reference file;
    # standard sinusoidal positional encoding evaluated at integer `index`
    # is assumed (returns shape (1, d_model)).
    pos = jnp.float32(index)
    i = jnp.arange(0, d_model, 2, dtype=jnp.float32)
    div = jnp.exp(-(jnp.log(10000.0) / d_model) * i)
    pe = jnp.zeros((1, d_model), jnp.float32)
    pe = pe.at[0, 0::2].set(jnp.sin(pos * div))
    pe = pe.at[0, 1::2].set(jnp.cos(pos * div)[: d_model // 2])
    return pe


def init_params(key, d_model, initial_size, kernel_size, inner_size):
    keys = jax.random.split(key, 6)

    def linear(k, fan_in, fan_out):
        kw, kb = jax.random.split(k)
        lim = 1.0 / math.sqrt(fan_in)
        w = jax.random.uniform(kw, (fan_in, fan_out), jnp.float32, -lim, lim)
        b = jax.random.uniform(kb, (1, fan_out), jnp.float32, -lim, lim)
        return w, b

    din = d_model + EXTRA_FLAG_LEN
    dout = kernel_size * kernel_size + 1
    return {
        "initial_param": jax.random.normal(
            keys[0], (1, 1, initial_size, initial_size), jnp.float32
        ),
        "initial_param_bias": jax.random.normal(
            keys[1], (1, 1, initial_size, initial_size), jnp.float32
        ),
        "weight_nn": linear(keys[2], din, inner_size) + linear(keys[3], inner_size, dout),
        "bias_nn": linear(keys[4], din, inner_size) + linear(keys[5], inner_size, dout),
    }


def vnn_block_two_forward(params, x, output_size, d_model, kernel_size,
                          use_bf16_weights=False):
    batch, input_space = x.shape
    k = kernel_size
    optimal_out_size = math.ceil(math.sqrt(input_space * output_size))
    optimal_bias_size = math.ceil(math.sqrt(output_size))

    s_w = params["initial_param"].shape[-1]
    s_b = params["initial_param_bias"].shape[-1]
    if k <= 1:
        assert s_w >= optimal_out_size and s_b >= optimal_bias_size

    n_w, s = 0, s_w
    while s < optimal_out_size:
        s *= k
        n_w += 1
    n_b, s = 0, s_b
    while s < optimal_bias_size:
        s *= k
        n_b += 1

    # Hoisted + batched MLPs: one Pallas call per network for ALL steps.
    n_max = max(n_w, n_b)
    dker = k * k
    if n_max > 0:
        enc = jnp.concatenate(
            [jnp.concatenate([pos_enc_index(i, d_model),
                              jnp.zeros((1, EXTRA_FLAG_LEN), jnp.float32)], axis=1)
             for i in range(n_max)],
            axis=0)                                          # (n_max, d_model + 10)
    w_steps = mlp_forward(enc[:n_w], *params["weight_nn"]) if n_w > 0 else None
    b_steps = mlp_forward(enc[:n_b], *params["bias_nn"]) if n_b > 0 else None

    # Whole expansion chain in ONE fused Pallas call per matrix.
    weight_matrix = params["initial_param"][0, 0]
    if n_w > 0:
        kers = [w_steps[i, :dker].reshape(k, k) for i in range(n_w)]
        bs = [w_steps[i, dker] for i in range(n_w)]
        weight_matrix = expand_matrix_all_steps(weight_matrix, kers, bs, k)

    bias_matrix = params["initial_param_bias"][0, 0]
    if n_b > 0:
        kers = [b_steps[i, :dker].reshape(k, k) for i in range(n_b)]
        bs = [b_steps[i, dker] for i in range(n_b)]
        bias_matrix = expand_matrix_all_steps(bias_matrix, kers, bs, k)

    assert weight_matrix.shape[0] ** 2 >= input_space * output_size
    assert bias_matrix.shape[0] ** 2 >= output_size

    # flatten + leading-slice (reference: flatten + index_select).
    # TODO(synk): this row-major reslice is a full relayout of the (In, Out)
    # weight in HBM; avoiding it would require Out-aligned expansion tiling,
    # left to XLA here.
    i_weight = (
        weight_matrix.reshape(-1)[: input_space * output_size]
        .reshape(input_space, output_size)
    )
    i_bias = bias_matrix.reshape(-1)[:output_size].reshape(1, output_size)

    if use_bf16_weights:
        x_mm = x.astype(jnp.bfloat16)
        w_mm = i_weight.astype(jnp.bfloat16)
    else:
        x_mm, w_mm = x, i_weight
    return matmul_bias(x_mm, w_mm, i_bias)


if __name__ == "__main__":
    d_model, initial_size, kernel_size, inner_size = 16, 2, 2, 32
    batch, input_space, output_size = 2, 16, 8

    key = jax.random.PRNGKey(0)
    pkey, xkey = jax.random.split(key)
    params = init_params(pkey, d_model, initial_size, kernel_size, inner_size)
    x = jax.random.normal(xkey, (batch, input_space), jnp.float32)

    fwd = jax.jit(
        vnn_block_two_forward,
        static_argnames=("output_size", "d_model", "kernel_size", "use_bf16_weights"),
    )
    out = fwd(params, x, output_size=output_size, d_model=d_model,
              kernel_size=kernel_size)
    out = jax.block_until_ready(out)
    assert out.shape == (batch, output_size) and out.dtype == jnp.float32
    print("KERNEL_OK")
</pallas_src>

<mosaic_0001>
module attributes {stable_mosaic.version = 11 : i64} {
  func.func @_mlp_kernel(%arg0: memref<8x26xf32, #tpu.memory_space<vmem>>, %arg1: memref<26x32xf32, #tpu.memory_space<vmem>>, %arg2: memref<1x32xf32, #tpu.memory_space<vmem>>, %arg3: memref<32x128xf32, #tpu.memory_space<vmem>>, %arg4: memref<1x128xf32, #tpu.memory_space<vmem>>, %arg5: memref<8x128xf32, #tpu.memory_space<vmem>>) attributes {dimension_semantics = [], scalar_prefetch = 0 : i64, scratch_operands = 0 : i64, tpu.core_type = #tpu.core_type<tc>} {
    %c0 = arith.constant 0 : index
    %c0_0 = arith.constant 0 : index
    %0 = vector.load %arg0[%c0, %c0_0] : memref<8x26xf32, #tpu.memory_space<vmem>>, vector<8x26xf32>
    %c0_1 = arith.constant 0 : index
    %c0_2 = arith.constant 0 : index
    %1 = vector.load %arg1[%c0_1, %c0_2] : memref<26x32xf32, #tpu.memory_space<vmem>>, vector<26x32xf32>
    %cst = arith.constant dense<0.000000e+00> : vector<8x32xf32>
    %2 = tpu.matmul %0, %1, %cst {dimension_numbers = #tpu.dot_dimension_numbers<[1], [0], [0], [1], [0, 0, 1, 1], [], []>} : vector<8x26xf32>, vector<26x32xf32>, vector<8x32xf32> -> vector<8x32xf32>
    %c0_3 = arith.constant 0 : index
    %c0_4 = arith.constant 0 : index
    %3 = vector.load %arg2[%c0_3, %c0_4] : memref<1x32xf32, #tpu.memory_space<vmem>>, vector<1x32xf32>
    %4 = vector.broadcast %3 : vector<1x32xf32> to vector<8x32xf32>
    %5 = arith.addf %2, %4 : vector<8x32xf32>
    %6 = math.tanh %5 : vector<8x32xf32>
    %c0_5 = arith.constant 0 : index
    %c0_6 = arith.constant 0 : index
    %7 = vector.load %arg3[%c0_5, %c0_6] : memref<32x128xf32, #tpu.memory_space<vmem>>, vector<32x128xf32>
    %cst_7 = arith.constant dense<0.000000e+00> : vector<8x128xf32>
    %8 = tpu.matmul %6, %7, %cst_7 {dimension_numbers = #tpu.dot_dimension_numbers<[1], [0], [0], [1], [0, 0, 1, 1], [], []>} : vector<8x32xf32>, vector<32x128xf32>, vector<8x128xf32> -> vector<8x128xf32>
    %c0_8 = arith.constant 0 : index
    %c0_9 = arith.constant 0 : index
    %9 = vector.load %arg4[%c0_8, %c0_9] : memref<1x128xf32, #tpu.memory_space<vmem>>, vector<1x128xf32>
    %10 = vector.broadcast %9 : vector<1x128xf32> to vector<8x128xf32>
    %11 = arith.addf %8, %10 : vector<8x128xf32>
    %c0_10 = arith.constant 0 : index
    %c0_11 = arith.constant 0 : index
    %12 = vector.load %arg5[%c0_10, %c0_11] : memref<8x128xf32, #tpu.memory_space<vmem>>, vector<8x128xf32>
    tpu.vector_store %arg5[%c0_10, %c0_11], %11 {strides = array<i32>} : memref<8x128xf32, #tpu.memory_space<vmem>>, vector<8x128xf32>,
    return
  }
}

module attributes {stable_mosaic.version = 11 : i64} {
  func.func @_fused_expand_kernel(%arg0: i32, %arg1: i32, %arg2: memref<2x2xf32, #tpu.memory_space<vmem>>, %arg3: memref<16x2xf32, #tpu.memory_space<vmem>>, %arg4: memref<2x16xf32, #tpu.memory_space<vmem>>, %arg5: memref<16x16xf32, #tpu.memory_space<vmem>>, %arg6: memref<16x16xf32, #tpu.memory_space<vmem>>, %arg7: memref<16x16xf32, #tpu.memory_space<vmem>>) attributes {dimension_semantics = [#tpu.dimension_semantics<parallel>, #tpu.dimension_semantics<parallel>], iteration_bounds = array<i64: 1, 1>, scalar_prefetch = 0 : i64, scratch_operands = 0 : i64, tpu.core_type = #tpu.core_type<tc>, window_params = [{pipeline_mode = #tpu.pipeline_mode<synchronous>, transform_indices = @transform_0, window_bounds = array<i64: 2, 2>}, {transform_indices = @transform_1, window_bounds = array<i64: 16, 2>}, {transform_indices = @transform_2, window_bounds = array<i64: 2, 16>}, {pipeline_mode = #tpu.pipeline_mode<synchronous>, transform_indices = @transform_3, window_bounds = array<i64: 16, 16>}, {pipeline_mode = #tpu.pipeline_mode<synchronous>, transform_indices = @transform_4, window_bounds = array<i64: 16, 16>}, {transform_indices = @transform_5, window_bounds = array<i64: 16, 16>}]} {
    %c0 = arith.constant 0 : index
    %c0_0 = arith.constant 0 : index
    %0 = vector.load %arg2[%c0, %c0_0] : memref<2x2xf32, #tpu.memory_space<vmem>>, vector<2x2xf32>
    %c0_1 = arith.constant 0 : index
    %c0_2 = arith.constant 0 : index
    %1 = vector.load %arg4[%c0_1, %c0_2] : memref<2x16xf32, #tpu.memory_space<vmem>>, vector<2x16xf32>
    %cst = arith.constant dense<0.000000e+00> : vector<2x16xf32>
    %2 = tpu.matmul %0, %1, %cst {dimension_numbers = #tpu.dot_dimension_numbers<[1], [0], [0], [1], [0, 0, 1, 1], [], []>} : vector<2x2xf32>, vector<2x16xf32>, vector<2x16xf32> -> vector<2x16xf32>
    %c0_3 = arith.constant 0 : index
    %c0_4 = arith.constant 0 : index
    %3 = vector.load %arg3[%c0_3, %c0_4] : memref<16x2xf32, #tpu.memory_space<vmem>>, vector<16x2xf32>
    %cst_5 = arith.constant dense<0.000000e+00> : vector<16x16xf32>
    %4 = tpu.matmul %3, %2, %cst_5 {dimension_numbers = #tpu.dot_dimension_numbers<[1], [0], [0], [1], [0, 0, 1, 1], [], []>} : vector<16x2xf32>, vector<2x16xf32>, vector<16x16xf32> -> vector<16x16xf32>
    %c0_6 = arith.constant 0 : index
    %c0_7 = arith.constant 0 : index
    %5 = vector.load %arg5[%c0_6, %c0_7] : memref<16x16xf32, #tpu.memory_space<vmem>>, vector<16x16xf32>
    %6 = arith.mulf %4, %5 : vector<16x16xf32>
    %c0_8 = arith.constant 0 : index
    %c0_9 = arith.constant 0 : index
    %7 = vector.load %arg6[%c0_8, %c0_9] : memref<16x16xf32, #tpu.memory_space<vmem>>, vector<16x16xf32>
    %8 = arith.addf %6, %7 : vector<16x16xf32>
    %c0_10 = arith.constant 0 : index
    %c0_11 = arith.constant 0 : index
    %9 = vector.load %arg7[%c0_10, %c0_11] : memref<16x16xf32, #tpu.memory_space<vmem>>, vector<16x16xf32>
    tpu.vector_store %arg7[%c0_10, %c0_11], %8 {strides = array<i32>} : memref<16x16xf32, #tpu.memory_space<vmem>>, vector<16x16xf32>,
    return
  }
  func.func @transform_0(%arg0: i32, %arg1: i32) -> (i32, i32) {
    %c0_i32 = arith.constant 0 : i32
    %c0_i32_0 = arith.constant 0 : i32
    %c0_i32_1 = arith.constant 0 : i32
    return %c0_i32, %c0_i32_0 : i32, i32
  }
  func.func @transform_1(%arg0: i32, %arg1: i32) -> (i32, i32) {
    %c0_i32 = arith.constant 0 : i32
    %c0_i32_0 = arith.constant 0 : i32
    return %arg0, %c0_i32 : i32, i32
  }
  func.func @transform_2(%arg0: i32, %arg1: i32) -> (i32, i32) {
    %c0_i32 = arith.constant 0 : i32
    %c0_i32_0 = arith.constant 0 : i32
    return %c0_i32, %arg1 : i32, i32
  }
  func.func @transform_3(%arg0: i32, %arg1: i32) -> (i32, i32) {
    %c0_i32 = arith.constant 0 : i32
    %c0_i32_0 = arith.constant 0 : i32
    %c0_i32_1 = arith.constant 0 : i32
    return %c0_i32, %c0_i32_0 : i32, i32
  }
  func.func @transform_4(%arg0: i32, %arg1: i32) -> (i32, i32) {
    %c0_i32 = arith.constant 0 : i32
    %c0_i32_0 = arith.constant 0 : i32
    %c0_i32_1 = arith.constant 0 : i32
    return %c0_i32, %c0_i32_0 : i32, i32
  }
  func.func @transform_5(%arg0: i32, %arg1: i32) -> (i32, i32) {
    %c0_i32 = arith.constant 0 : i32
    return %arg0, %arg1 : i32, i32
  }
}

module attributes {stable_mosaic.version = 11 : i64} {
  func.func @_fused_expand_kernel(%arg0: i32, %arg1: i32, %arg2: memref<2x2xf32, #tpu.memory_space<vmem>>, %arg3: memref<4x2xf32, #tpu.memory_space<vmem>>, %arg4: memref<2x4xf32, #tpu.memory_space<vmem>>, %arg5: memref<4x4xf32, #tpu.memory_space<vmem>>, %arg6: memref<4x4xf32, #tpu.memory_space<vmem>>, %arg7: memref<4x4xf32, #tpu.memory_space<vmem>>) attributes {dimension_semantics = [#tpu.dimension_semantics<parallel>, #tpu.dimension_semantics<parallel>], iteration_bounds = array<i64: 1, 1>, scalar_prefetch = 0 : i64, scratch_operands = 0 : i64, tpu.core_type = #tpu.core_type<tc>, window_params = [{pipeline_mode = #tpu.pipeline_mode<synchronous>, transform_indices = @transform_0, window_bounds = array<i64: 2, 2>}, {transform_indices = @transform_1, window_bounds = array<i64: 4, 2>}, {transform_indices = @transform_2, window_bounds = array<i64: 2, 4>}, {pipeline_mode = #tpu.pipeline_mode<synchronous>, transform_indices = @transform_3, window_bounds = array<i64: 4, 4>}, {pipeline_mode = #tpu.pipeline_mode<synchronous>, transform_indices = @transform_4, window_bounds = array<i64: 4, 4>}, {transform_indices = @transform_5, window_bounds = array<i64: 4, 4>}]} {
    %c0 = arith.constant 0 : index
    %c0_0 = arith.constant 0 : index
    %0 = vector.load %arg2[%c0, %c0_0] : memref<2x2xf32, #tpu.memory_space<vmem>>, vector<2x2xf32>
    %c0_1 = arith.constant 0 : index
    %c0_2 = arith.constant 0 : index
    %1 = vector.load %arg4[%c0_1, %c0_2] : memref<2x4xf32, #tpu.memory_space<vmem>>, vector<2x4xf32>
    %cst = arith.constant dense<0.000000e+00> : vector<2x4xf32>
    %2 = tpu.matmul %0, %1, %cst {dimension_numbers = #tpu.dot_dimension_numbers<[1], [0], [0], [1], [0, 0, 1, 1], [], []>} : vector<2x2xf32>, vector<2x4xf32>, vector<2x4xf32> -> vector<2x4xf32>
    %c0_3 = arith.constant 0 : index
    %c0_4 = arith.constant 0 : index
    %3 = vector.load %arg3[%c0_3, %c0_4] : memref<4x2xf32, #tpu.memory_space<vmem>>, vector<4x2xf32>
    %cst_5 = arith.constant dense<0.000000e+00> : vector<4x4xf32>
    %4 = tpu.matmul %3, %2, %cst_5 {dimension_numbers = #tpu.dot_dimension_numbers<[1], [0], [0], [1], [0, 0, 1, 1], [], []>} : vector<4x2xf32>, vector<2x4xf32>, vector<4x4xf32> -> vector<4x4xf32>
    %c0_6 = arith.constant 0 : index
    %c0_7 = arith.constant 0 : index
    %5 = vector.load %arg5[%c0_6, %c0_7] : memref<4x4xf32, #tpu.memory_space<vmem>>, vector<4x4xf32>
    %6 = arith.mulf %4, %5 : vector<4x4xf32>
    %c0_8 = arith.constant 0 : index
    %c0_9 = arith.constant 0 : index
    %7 = vector.load %arg6[%c0_8, %c0_9] : memref<4x4xf32, #tpu.memory_space<vmem>>, vector<4x4xf32>
    %8 = arith.addf %6, %7 : vector<4x4xf32>
    %c0_10 = arith.constant 0 : index
    %c0_11 = arith.constant 0 : index
    %9 = vector.load %arg7[%c0_10, %c0_11] : memref<4x4xf32, #tpu.memory_space<vmem>>, vector<4x4xf32>
    tpu.vector_store %arg7[%c0_10, %c0_11], %8 {strides = array<i32>} : memref<4x4xf32, #tpu.memory_space<vmem>>, vector<4x4xf32>,
    return
  }
  func.func @transform_0(%arg0: i32, %arg1: i32) -> (i32, i32) {
    %c0_i32 = arith.constant 0 : i32
    %c0_i32_0 = arith.constant 0 : i32
    %c0_i32_1 = arith.constant 0 : i32
    return %c0_i32, %c0_i32_0 : i32, i32
  }
  func.func @transform_1(%arg0: i32, %arg1: i32) -> (i32, i32) {
    %c0_i32 = arith.constant 0 : i32
    %c0_i32_0 = arith.constant 0 : i32
    return %arg0, %c0_i32 : i32, i32
  }
  func.func @transform_2(%arg0: i32, %arg1: i32) -> (i32, i32) {
    %c0_i32 = arith.constant 0 : i32
    %c0_i32_0 = arith.constant 0 : i32
    return %c0_i32, %arg1 : i32, i32
  }
  func.func @transform_3(%arg0: i32, %arg1: i32) -> (i32, i32) {
    %c0_i32 = arith.constant 0 : i32
    %c0_i32_0 = arith.constant 0 : i32
    %c0_i32_1 = arith.constant 0 : i32
    return %c0_i32, %c0_i32_0 : i32, i32
  }
  func.func @transform_4(%arg0: i32, %arg1: i32) -> (i32, i32) {
    %c0_i32 = arith.constant 0 : i32
    %c0_i32_0 = arith.constant 0 : i32
    %c0_i32_1 = arith.constant 0 : i32
    return %c0_i32, %c0_i32_0 : i32, i32
  }
  func.func @transform_5(%arg0: i32, %arg1: i32) -> (i32, i32) {
    %c0_i32 = arith.constant 0 : i32
    return %arg0, %arg1 : i32, i32
  }
}

module attributes {stable_mosaic.version = 11 : i64} {
  func.func @_matmul_bias_kernel(%arg0: i32, %arg1: i32, %arg2: memref<2x16xf32, #tpu.memory_space<vmem>>, %arg3: memref<16x8xf32, #tpu.memory_space<vmem>>, %arg4: memref<1x8xf32, #tpu.memory_space<vmem>>, %arg5: memref<2x8xf32, #tpu.memory_space<vmem>>, %arg6: memref<2x8xf32, #tpu.memory_space<vmem>>) attributes {dimension_semantics = [#tpu.dimension_semantics<parallel>, #tpu.dimension_semantics<arbitrary>], iteration_bounds = array<i64: 1, 1>, scalar_prefetch = 0 : i64, scratch_operands = 1 : i64, tpu.core_type = #tpu.core_type<tc>, window_params = [{transform_indices = @transform_0, window_bounds = array<i64: 2, 16>}, {transform_indices = @transform_1, window_bounds = array<i64: 16, 8>}, {transform_indices = @transform_2, window_bounds = array<i64: 1, 8>}, {transform_indices = @transform_3, window_bounds = array<i64: 2, 8>}]} {
    %c0_i32 = arith.constant 0 : i32
    %0 = arith.cmpi eq, %arg1, %c0_i32 : i32
    %1 = arith.extui %0 : i1 to i32
    %c0_i32_0 = arith.constant 0 : i32
    %2 = arith.cmpi ne, %1, %c0_i32_0 : i32
    scf.if %2 {
      %cst_10 = arith.constant 0.000000e+00 : f32
      %12 = vector.broadcast %cst_10 : f32 to vector<2x8xf32>
      %c0_11 = arith.constant 0 : index
      %c0_12 = arith.constant 0 : index
      %13 = vector.load %arg6[%c0_11, %c0_12] : memref<2x8xf32, #tpu.memory_space<vmem>>, vector<2x8xf32>
      tpu.vector_store %arg6[%c0_11, %c0_12], %12 {strides = array<i32>} : memref<2x8xf32, #tpu.memory_space<vmem>>, vector<2x8xf32>,
    } else {
    }
    %c0 = arith.constant 0 : index
    %c0_1 = arith.constant 0 : index
    %3 = vector.load %arg6[%c0, %c0_1] : memref<2x8xf32, #tpu.memory_space<vmem>>, vector<2x8xf32>
    %c0_2 = arith.constant 0 : index
    %c0_3 = arith.constant 0 : index
    %4 = vector.load %arg2[%c0_2, %c0_3] : memref<2x16xf32, #tpu.memory_space<vmem>>, vector<2x16xf32>
    %c0_4 = arith.constant 0 : index
    %c0_5 = arith.constant 0 : index
    %5 = vector.load %arg3[%c0_4, %c0_5] : memref<16x8xf32, #tpu.memory_space<vmem>>, vector<16x8xf32>
    %cst = arith.constant dense<0.000000e+00> : vector<2x8xf32>
    %6 = tpu.matmul %4, %5, %cst {dimension_numbers = #tpu.dot_dimension_numbers<[1], [0], [0], [1], [0, 0, 1, 1], [], []>} : vector<2x16xf32>, vector<16x8xf32>, vector<2x8xf32> -> vector<2x8xf32>
    %7 = arith.addf %3, %6 : vector<2x8xf32>
    %c0_6 = arith.constant 0 : index
    %c0_7 = arith.constant 0 : index
    %8 = vector.load %arg6[%c0_6, %c0_7] : memref<2x8xf32, #tpu.memory_space<vmem>>, vector<2x8xf32>
    tpu.vector_store %arg6[%c0_6, %c0_7], %7 {strides = array<i32>} : memref<2x8xf32, #tpu.memory_space<vmem>>, vector<2x8xf32>,
    %c0_i32_8 = arith.constant 0 : i32
    %9 = arith.cmpi eq, %arg1, %c0_i32_8 : i32
    %10 = arith.extui %9 : i1 to i32
    %c0_i32_9 = arith.constant 0 : i32
    %11 = arith.cmpi ne, %10, %c0_i32_9 : i32
    scf.if %11 {
      %c0_10 = arith.constant 0 : index
      %c0_11 = arith.constant 0 : index
      %12 = vector.load %arg6[%c0_10, %c0_11] : memref<2x8xf32, #tpu.memory_space<vmem>>, vector<2x8xf32>
      %c0_12 = arith.constant 0 : index
      %c0_13 = arith.constant 0 : index
      %13 = vector.load %arg4[%c0_12, %c0_13] : memref<1x8xf32, #tpu.memory_space<vmem>>, vector<1x8xf32>
      %14 = vector.broadcast %13 : vector<1x8xf32> to vector<2x8xf32>
      %15 = arith.addf %12, %14 : vector<2x8xf32>
      %c0_14 = arith.constant 0 : index
      %c0_15 = arith.constant 0 : index
      %16 = vector.load %arg5[%c0_14, %c0_15] : memref<2x8xf32, #tpu.memory_space<vmem>>, vector<2x8xf32>
      tpu.vector_store %arg5[%c0_14, %c0_15], %15 {strides = array<i32>} : memref<2x8xf32, #tpu.memory_space<vmem>>, vector<2x8xf32>,
    } else {
    }
    return
  }
  func.func @transform_0(%arg0: i32, %arg1: i32) -> (i32, i32) {
    %c0_i32 = arith.constant 0 : i32
    %c0_i32_0 = arith.constant 0 : i32
    return %c0_i32, %arg1 : i32, i32
  }
  func.func @transform_1(%arg0: i32, %arg1: i32) -> (i32, i32) {
    %c0_i32 = arith.constant 0 : i32
    return %arg1, %arg0 : i32, i32
  }
  func.func @transform_2(%arg0: i32, %arg1: i32) -> (i32, i32) {
    %c0_i32 = arith.constant 0 : i32
    %c0_i32_0 = arith.constant 0 : i32
    return %c0_i32, %arg0 : i32, i32
  }
  func.func @transform_3(%arg0: i32, %arg1: i32) -> (i32, i32) {
    %c0_i32 = arith.constant 0 : i32
    %c0_i32_0 = arith.constant 0 : i32
    return %c0_i32, %arg0 : i32, i32
  }
}

</mosaic_0001>

<bundles_post_ra>
// kernel: mul.4
= control target key start
LH: loop header
LB: loop body
LE: loop exit
PB: predicated region body
PF: predicated region fallthrough
CT: control target
= control target key end

     0   :  { %vm7_vm0 = vcmask 15360   ;;  %s39_s0 = inlined_call_operand.vmem [shape: f32[4], index: 0, kind: input, shape index: {}]   ;;  %s40_s1 = inlined_call_operand.vmem [shape: f32[2,2], index: 1, kind: output, shape index: {}]  }
   0x1   :  { %v4_v0 = vld [vmem:[%s39_s0] sm:$0x1]  ;;  %s22_s0 = smov 126  }
   0x2   :  { %5 = vst [vmem:[#allocation1] sm:$0x1] %v4_v0 }
   0x9   :  { %v9_v1 = vld [vmem:[#allocation1] sm:$0x1]  }
   0xa   :  { %v6_v2 = vld [vmem:[#allocation1] sm:$0x1]   ;;  %10 = vrot.lane.b32.xlu0 %v9_v1, %s22_s0 }
   0xb   :  { %8 = vst.msk [vmem:[#allocation0] sm:$0x1] %vm7_vm0, %v6_v2  }
  0x7c   :  { %v11_v3 = vpop.permute.xlu0 %10  }
  0x7d   :  { %14 = vst.msk [vmem:[#allocation0 + $0x1] sm:$0x1] %vm7_vm0, %v11_v3  }
  0x84   :  { %v18_v4 = vld [vmem:[#allocation0] sm:$0x3] }
  0x85   :  { %20 = vst [vmem:[%s40_s1] sm:$0x3] %v18_v4 }

// kernel: tile.22
= control target key start
LH: loop header
LB: loop body
LE: loop exit
PB: predicated region body
PF: predicated region fallthrough
CT: control target
= control target key end

     0   :  { %s154_s0 = inlined_call_operand.vmem [shape: f32[8,8], index: 0, kind: input, shape index: {}]   ;;  %s155_s1 = inlined_call_operand.vmem [shape: f32[2,8,2,8], index: 1, kind: output, shape index: {}]  }
   0x1   :  { %v4_v0 = vld [vmem:[%s154_s0] ss:$0 sm:$0xff]  ;;  %v51_v1 = vld [vmem:[%s154_s0 + $0x1] ss:$0 sm:$0xff]  ;;  %v54_v2 = vld [vmem:[%s154_s0 + $0x2] ss:$0 sm:$0xff] }
   0x2   :  { %5 = vst [vmem:[%s155_s1] sm:$0x3] %v4_v0  ;;  %50 = vst [vmem:[%s155_s1 + $0x10] sm:$0x3] %v4_v0  ;;  %v57_v3 = vld [vmem:[%s154_s0 + $0x3] ss:$0 sm:$0xff] }
   0x3   :  { %52 = vst [vmem:[%s155_s1 + $0x2] sm:$0x3] %v51_v1  ;;  %53 = vst [vmem:[%s155_s1 + $0x12] sm:$0x3] %v51_v1  ;;  %v60_v4 = vld [vmem:[%s154_s0 + $0x4] ss:$0 sm:$0xff] }
   0x4   :  { %55 = vst [vmem:[%s155_s1 + $0x4] sm:$0x3] %v54_v2  ;;  %56 = vst [vmem:[%s155_s1 + $0x14] sm:$0x3] %v54_v2  ;;  %v63_v5 = vld [vmem:[%s154_s0 + $0x5] ss:$0 sm:$0xff] }
   0x5   :  { %58 = vst [vmem:[%s155_s1 + $0x6] sm:$0x3] %v57_v3  ;;  %59 = vst [vmem:[%s155_s1 + $0x16] sm:$0x3] %v57_v3  ;;  %v66_v6 = vld [vmem:[%s154_s0 + $0x6] ss:$0 sm:$0xff] }
   0x6   :  { %61 = vst [vmem:[%s155_s1 + $0x8] sm:$0x3] %v60_v4  ;;  %62 = vst [vmem:[%s155_s1 + $0x18] sm:$0x3] %v60_v4  ;;  %v69_v7 = vld [vmem:[%s154_s0 + $0x7] ss:$0 sm:$0xff] }
   0x7   :  { %64 = vst [vmem:[%s155_s1 + $0xa] sm:$0x3] %v63_v5  ;;  %65 = vst [vmem:[%s155_s1 + $0x1a] sm:$0x3] %v63_v5 }
   0x8   :  { %67 = vst [vmem:[%s155_s1 + $0xc] sm:$0x3] %v66_v6  ;;  %68 = vst [vmem:[%s155_s1 + $0x1c] sm:$0x3] %v66_v6 }
   0x9   :  { %70 = vst [vmem:[%s155_s1 + $0xe] sm:$0x3] %v69_v7  ;;  %71 = vst [vmem:[%s155_s1 + $0x1e] sm:$0x3] %v69_v7 }

// kernel: tile.23
= control target key start
LH: loop header
LB: loop body
LE: loop exit
PB: predicated region body
PF: predicated region fallthrough
CT: control target
= control target key end

     0   :  { %vm82_vm0 = vcmask 1047556   ;;  %vm84_vm1 = vcmask 64512   ;;  %vm103_vm2 = vcmask 130112   ;;  %s225_s0 = inlined_call_operand.vmem [shape: f32[2,8,2,8], index: 0, kind: input, shape index: {}]   ;;  %s226_s1 = inlined_call_operand.vmem [shape: f32[16,16], index: 1, kind: output, shape index: {}]  }
   0x1   :  { %v138_v0 = vld [vmem:[%s225_s0 + $0xe] sm:$0x3]  ;;  %v139_v1 = vld [vmem:[%s225_s0 + $0xc] sm:$0x3]  ;;  %v140_v2 = vld [vmem:[%s225_s0 + $0xa] sm:$0x3] }
   0x2   :  { %48 = vst [vmem:[#allocation0 + $0x38] sm:$0x3] %v138_v0  ;;  %53 = vst [vmem:[#allocation0 + $0x30] sm:$0x3] %v139_v1  ;;  %v141_v3 = vld [vmem:[%s225_s0 + $0x8] sm:$0x3] }
   0x3   :  { %58 = vst [vmem:[#allocation0 + $0x28] sm:$0x3] %v140_v2  ;;  %v142_v4 = vld [vmem:[%s225_s0 + $0x6] sm:$0x3]  ;;  %v143_v5 = vld [vmem:[%s225_s0 + $0x4] sm:$0x3] }
   0x4   :  { %63 = vst [vmem:[#allocation0 + $0x20] sm:$0x3] %v141_v3  ;;  %68 = vst [vmem:[#allocation0 + $0x18] sm:$0x3] %v142_v4  ;;  %v144_v6 = vld [vmem:[%s225_s0 + $0x2] sm:$0x3] }
   0x5   :  { %73 = vst [vmem:[#allocation0 + $0x10] sm:$0x3] %v143_v5  ;;  %v78_v7 = vld [vmem:[%s225_s0] sm:$0x3]  ;;  %77 = vst [vmem:[#allocation0 + $0x8] sm:$0x3] %v144_v6 }
   0x6   :  { %79 = vst [vmem:[#allocation0] sm:$0x3] %v78_v7  ;;  %v130_v8 = vld [vmem:[%s225_s0 + $0x1e] sm:$0x3]  ;;  %v131_v9 = vld [vmem:[%s225_s0 + $0x1c] sm:$0x3] }
   0x7   :  { %v132_v10 = vld [vmem:[%s225_s0 + $0x1a] sm:$0x3]  ;;  %8 = vst [vmem:[#allocation0 + $0x78] sm:$0x3] %v130_v8  ;;  %13 = vst [vmem:[#allocation0 + $0x70] sm:$0x3] %v131_v9 }
   0x8   :  { %18 = vst [vmem:[#allocation0 + $0x68] sm:$0x3] %v132_v10  ;;  %v133_v11 = vld [vmem:[%s225_s0 + $0x18] sm:$0x3]  ;;  %v134_v12 = vld [vmem:[%s225_s0 + $0x16] sm:$0x3] }
   0x9   :  { %v135_v13 = vld [vmem:[%s225_s0 + $0x14] sm:$0x3]  ;;  %23 = vst [vmem:[#allocation0 + $0x60] sm:$0x3] %v133_v11  ;;  %28 = vst [vmem:[#allocation0 + $0x58] sm:$0x3] %v134_v12 }
   0xa   :  { %33 = vst [vmem:[#allocation0 + $0x50] sm:$0x3] %v135_v13  ;;  %v136_v14 = vld [vmem:[%s225_s0 + $0x12] sm:$0x3]  ;;  %v137_v15 = vld [vmem:[%s225_s0 + $0x10] sm:$0x3] }
   0xb   :  { %38 = vst [vmem:[#allocation0 + $0x48] sm:$0x3] %v136_v14  ;;  %43 = vst [vmem:[#allocation0 + $0x40] sm:$0x3] %v137_v15  ;;  %s148_s0 = smov 8  }
   0xc   :  { %v98_v16 = vld [vmem:[#allocation0 + $0x1] ss:$8 sm:$0xf0]   ;;  %v81_v17 = vld [vmem:[#allocation0] ss:$8 sm:$0xf0]  }
   0xd   :  { %v96_v18 = vld [vmem:[#allocation0 + $0x1] ss:$8 sm:$0xf]   ;;  %v80_v19 = vld [vmem:[#allocation0] ss:$8 sm:$0xf]  }
   0xe   :  { %v100_v20 = vsel %vm82_vm0, %v98_v16, %v96_v18  ;;  %v83_v21 = vsel %vm82_vm0, %v81_v17, %v80_v19 }
   0xf   :  { %101 = vrot.lane.b32.xlu0 %v100_v20, %s148_s0  ;;  %85 = vst.msk [vmem:[%s226_s1] sm:$0xff] %vm84_vm1, %v83_v21  }
  0x10   :  { %v108_v22 = vld [vmem:[#allocation0 + $0x41] ss:$8 sm:$0xf0]   ;;  %v89_v23 = vld [vmem:[#allocation0 + $0x40] ss:$8 sm:$0xf0]  }
  0x12   :  { %v106_v24 = vld [vmem:[#allocation0 + $0x41] ss:$8 sm:$0xf]   ;;  %v87_v25 = vld [vmem:[#allocation0 + $0x40] ss:$8 sm:$0xf]  }
  0x13   :  { %v110_v26 = vsel %vm82_vm0, %v108_v22, %v106_v24  ;;  %v91_v27 = vsel %vm82_vm0, %v89_v23, %v87_v25 }
  0x14   :  { %145 = vst.msk [vmem:[%s226_s1 + $0x8] sm:$0xff] %vm84_vm1, %v91_v27   ;;  %111 = vrot.lane.b32.xlu0 %v110_v26, %s148_s0 }
  0x81   :  { %v102_v28 = vpop.permute.xlu0 %101  }
  0x82   :  { %104 = vst.msk [vmem:[%s226_s1] sm:$0xff] %vm103_vm2, %v102_v28  }
  0x86   :  { %v112_v29 = vpop.permute.xlu0 %111  }
  0x87   :  { %146 = vst.msk [vmem:[%s226_s1 + $0x8] sm:$0xff] %vm103_vm2, %v112_v29  }

// kernel: vnn_block_two_forward.5
= control target key start
LH: loop header
LB: loop body
LE: loop exit
PB: predicated region body
PF: predicated region fallthrough
CT: control target
= control target key end

     0   :  { %v257_v0 = vmov 0.0|0.0   ;;  %vm36_vm0 = vcmask 1041408   ;;  %vm258_vm1 = vmmov 0   ;;  %v259_v6 = vmov 0.0   ;;  %s327_s1 = inlined_call_operand.vmem [shape: f32[26,32], index: 1, kind: input, shape index: {}]   ;;  %s328_s0 = inlined_call_operand.vmem [shape: f32[8,26], index: 0, kind: input, shape index: {}]   ;;  %s329_s3 = inlined_call_operand.vmem [shape: f32[32,128], index: 3, kind: input, shape index: {}]   ;;  %s330_s2 = inlined_call_operand.vmem [shape: f32[1,32], index: 2, kind: input, shape index: {}]   ;;  %s331_s4 = inlined_call_operand.vmem [shape: f32[1,128], index: 4, kind: input, shape index: {}]   ;;  %s332_s5 = inlined_call_operand.vmem [shape: f32[8,128], index: 5, kind: output, shape index: {}]  }
   0x1   :  { %238 = vmatprep.subr.bf16.mxu0 %v257_v0  ;;  %v21_v1 = vld [vmem:[%s327_s1] sm:$0xff]  ;;  %v22_v2 = vld [vmem:[%s327_s1 + $0x8] sm:$0xff]  ;;  %v23_v3 = vld [vmem:[%s327_s1 + $0x10] sm:$0xff]  ;;  %245 = vmatprep.subr.bf16.mxu1 %v257_v0  ;;  %vm260_vm2 = vmmov 1   ;;  %vm32_vm4 = vcmask 211968   ;;  %vm122_vm5 = vcmask 261120  }
   0x2   :  { %v239_v4 = vpack.c.bf16 %v22_v2, %v21_v1  ;;  %v24_v5 = vld [vmem:[%s327_s1 + $0x18] sm:$0x3]  ;;  %224 = vmatprep.mubr.msk.f32.mxu0 %vm258_vm1, %v259_v6  ;;  %235 = vmatprep.mubr.msk.f32.mxu1 %vm258_vm1, %v259_v6  ;;  %vm243_vm3 = vmpackc.low %vm36_vm0, %vm260_vm2  ;;  %v20_v8 = vld [vmem:[%s328_s0] sm:$0xff] }
   0x3   :  { %v242_v7 = vpack.c.bf16 %v24_v5, %v23_v3  ;;  %v111_v9 = vld [vmem:[%s329_s3] sm:$0xff]  ;;  %v112_v10 = vld [vmem:[%s329_s3 + $0x8] sm:$0xff]  ;;  %v113_v11 = vld [vmem:[%s329_s3 + $0x10] sm:$0xff] }
   0x4   :  { %240 = vmatpush3.bf16.msra.mxu0 %v239_v4  ;;  %v246_v12 = vpack.c.bf16 %v112_v10, %v111_v9  ;;  %v114_v13 = vld [vmem:[%s329_s3 + $0x18] sm:$0xff]  ;;  %v201_v15 = vld [vmem:[%s330_s2] ss:$0 sm:$0xff] }
   0x5   :  { %241 = vmatprep.subr.bf16.mxu0 %v257_v0  ;;  %v249_v14 = vpack.c.bf16 %v114_v13, %v113_v11  ;;  %v204_v20 = vld [vmem:[%s331_s4] ss:$0 sm:$0xff] }
   0x6   :  { %247 = vmatpush3.bf16.msra.mxu1 %v246_v12 }
   0x7   :  { %248 = vmatprep.subr.bf16.mxu1 %v257_v0 }
   0x8   :  { %244 = vmatpush3.bf16.msk.msra.mxu0 %vm243_vm3, %v242_v7 }
   0xa   :  { %250 = vmatpush3.bf16.msra.mxu1 %v249_v14 }
   0xb   :  { %225 = vmatmul.mubr.msk.f32.vlgmr.msra.gmra.mrb[0].mxu0 %vm32_vm4, %v20_v8 }
  0xde   :  { %v106_v16 = vpop.f32.mrb[0].mxu0 }
  0xdf   :  { %v107_v17 = vadd.f32 %v201_v15, %v106_v16  ;;  %v226_v18 = vpop.f32.mrb[1].mxu0 }
  0xe1   :  { %255 = vtanh.f32 %v107_v17 }
  0xeb   :  { %v256_v19 = vpop.eup %255 }
  0xec   :  { %236 = vmatmul.mubr.msk.f32.vlgmr.msra.gmra.mrb[0].mxu1 %vm122_vm5, %v256_v19 }
 0x1bf   :  { %v192_v21 = vpop.f32.mrb[0].mxu1 }
 0x1c0   :  { %v193_v22 = vadd.f32 %v204_v20, %v192_v21  ;;  %v237_v23 = vpop.f32.mrb[1].mxu1 }
 0x1c2   :  { %196 = vst [vmem:[%s332_s5] sm:$0xff] %v193_v22 }

// kernel: vnn_block_two_forward.7
= control target key start
LH: loop header
LB: loop body
LE: loop exit
PB: predicated region body
PF: predicated region fallthrough
CT: control target
= control target key end

     0   :  { %vm26_vm0 = vcmask 1041408   ;;  %vm22_vm1 = vcmask 15360   ;;  %v223_v0 = vmov 0.0   ;;  %vm224_vm2 = vmmov 0   ;;  %s291_s2 = inlined_call_operand.vmem [shape: f32[2,16], index: 2, kind: input, shape index: {}]   ;;  %s292_s0 = inlined_call_operand.vmem [shape: f32[2,2], index: 0, kind: input, shape index: {}]   ;;  %s293_s1 = inlined_call_operand.vmem [shape: f32[16,2], index: 1, kind: input, shape index: {}]   ;;  %s294_s3 = inlined_call_operand.vmem [shape: f32[16,16], index: 3, kind: input, shape index: {}]   ;;  %s295_s4 = inlined_call_operand.vmem [shape: f32[16,16], index: 4, kind: input, shape index: {}]   ;;  %s296_s5 = inlined_call_operand.vmem [shape: f32[16,16], index: 5, kind: output, shape index: {}]  }
   0x1   :  { %211 = vmatprep.subr.mxu0 %v223_v0  ;;  %v21_v1 = vld [vmem:[%s291_s2] sm:$0x3]  ;;  %213 = vmatprep.mubr.msk.f32.mxu0 %vm224_vm2, %v223_v0  ;;  %v101_v5 = vld [vmem:[%s293_s1 + $0x8] sm:$0xff]  ;;  %vm194_vm3 = vcmask 130048  }
   0x2   :  { %v20_v2 = vld [vmem:[%s292_s0] sm:$0x3]  ;;  %212 = vmatpush3.msk.msra.mxu0 %vm26_vm0, %v21_v1  ;;  %v187_v7 = vld [vmem:[%s294_s3 + $0x8] sm:$0xff] }
   0x3   :  { %214 = vmatmul.mubr.msk.f32.vlgmr.msra.gmra.mrb[0].mxu0 %vm22_vm1, %v20_v2  ;;  %v100_v3 = vld [vmem:[%s293_s1] sm:$0xff]  ;;  %v191_v10 = vld [vmem:[%s295_s4 + $0x8] sm:$0xff] }
   0x4   :  { %218 = vmatprep.mubr.msk.f32.mxu1 %vm22_vm1, %v100_v3  ;;  %v186_v8 = vld [vmem:[%s294_s3] sm:$0xff] }
   0x5   :  { %v190_v13 = vld [vmem:[%s295_s4] sm:$0xff] }
  0xd6   :  { %v96_v4 = vpop.f32.mrb[0].mxu0 }
  0xd7   :  { %v215_v6 = vpop.f32.mrb[1].mxu0  ;;  %216 = vmatprep.subr.msk.mxu1 %vm26_vm0, %v96_v4 }
  0xd8   :  { %217 = vmatpush3.msk.msra.mxu1 %vm26_vm0, %v96_v4 }
  0xd9   :  { %219 = vmatmul.mubr.msk.f32.vlgmr.msra.gmra.mrb[0].mxu1 %vm22_vm1, %v101_v5 }
 0x1ac   :  { %v220_v9 = vpop.f32.mrb[0].mxu1 }
 0x1ad   :  { %v189_v11 = vmul.f32 %v220_v9, %v187_v7  ;;  %v177_v12 = vpop.f32.mrb[1].mxu1 }
 0x1ae   :  { %v188_v14 = vmul.f32 %v186_v8, %v177_v12 }
 0x1af   :  { %v193_v15 = vadd.f32 %v191_v10, %v189_v11 }
 0x1b0   :  { %v192_v16 = vadd.f32 %v190_v13, %v188_v14 }
 0x1b1   :  { %196 = vst.msk [vmem:[%s296_s5 + $0x8] sm:$0xff] %vm194_vm3, %v193_v15 }
 0x1b2   :  { %195 = vst.msk [vmem:[%s296_s5] sm:$0xff] %vm194_vm3, %v192_v16 }

// kernel: vnn_block_two_forward.8
= control target key start
LH: loop header
LB: loop body
LE: loop exit
PB: predicated region body
PF: predicated region fallthrough
CT: control target
= control target key end

     0   :  { %vm26_vm0 = vcmask 1041408   ;;  %vm22_vm1 = vcmask 15360   ;;  %v207_v0 = vmov 0.0   ;;  %vm208_vm2 = vmmov 0   ;;  %s261_s2 = inlined_call_operand.vmem [shape: f32[2,4], index: 2, kind: input, shape index: {}]   ;;  %s262_s0 = inlined_call_operand.vmem [shape: f32[2,2], index: 0, kind: input, shape index: {}]   ;;  %s263_s1 = inlined_call_operand.vmem [shape: f32[4,2], index: 1, kind: input, shape index: {}]   ;;  %s264_s3 = inlined_call_operand.vmem [shape: f32[4,4], index: 3, kind: input, shape index: {}]   ;;  %s265_s4 = inlined_call_operand.vmem [shape: f32[4,4], index: 4, kind: input, shape index: {}]   ;;  %s266_s5 = inlined_call_operand.vmem [shape: f32[4,4], index: 5, kind: output, shape index: {}]  }
   0x1   :  { %195 = vmatprep.subr.mxu0 %v207_v0  ;;  %v21_v1 = vld [vmem:[%s261_s2] sm:$0x3]  ;;  %197 = vmatprep.mubr.msk.f32.mxu0 %vm208_vm2, %v207_v0  ;;  %vm181_vm3 = vcmask 27648  }
   0x2   :  { %v20_v2 = vld [vmem:[%s262_s0] sm:$0x3]  ;;  %196 = vmatpush3.msk.msra.mxu0 %vm26_vm0, %v21_v1  ;;  %200 = vmatprep.subr.mxu1 %v207_v0 }
   0x3   :  { %198 = vmatmul.mubr.msk.f32.vlgmr.msra.gmra.mrb[0].mxu0 %vm22_vm1, %v20_v2  ;;  %202 = vmatprep.mubr.msk.f32.mxu1 %vm208_vm2, %v207_v0  ;;  %v100_v3 = vld [vmem:[%s263_s1] sm:$0xf] }
   0x4   :  { %v177_v6 = vld [vmem:[%s264_s3] sm:$0xf] }
   0x5   :  { %v179_v8 = vld [vmem:[%s265_s4] sm:$0xf] }
  0xd6   :  { %v96_v4 = vpop.f32.mrb[0].mxu0 }
  0xd7   :  { %v199_v5 = vpop.f32.mrb[1].mxu0  ;;  %201 = vmatpush3.msk.msra.mxu1 %vm26_vm0, %v96_v4 }
  0xd8   :  { %203 = vmatmul.mubr.msk.f32.vlgmr.msra.gmra.mrb[0].mxu1 %vm22_vm1, %v100_v3 }
 0x1ab   :  { %v173_v7 = vpop.f32.mrb[0].mxu1 }
 0x1ac   :  { %v178_v9 = vmul.f32 %v177_v6, %v173_v7  ;;  %v204_v10 = vpop.f32.mrb[1].mxu1 }
 0x1ae   :  { %v180_v11 = vadd.f32 %v179_v8, %v178_v9 }
 0x1b0   :  { %182 = vst.msk [vmem:[%s266_s5] sm:$0xf] %vm181_vm3, %v180_v11 }

// kernel: vnn_block_two_forward.9
= control target key start
LH: loop header
LB: loop body
LE: loop exit
PB: predicated region body
PF: predicated region fallthrough
CT: control target
= control target key end

     0   :  { %vm19_vm0 = vcmask 58368   ;;  %v172_v2 = vmov 0.0|0.0   ;;  %v173_v4 = vmov 0.0   ;;  %vm174_vm1 = vmmov 0   ;;  %s223_s0 = inlined_call_operand.vmem [shape: f32[2,16], index: 0, kind: input, shape index: {}]   ;;  %s224_s1 = inlined_call_operand.vmem [shape: f32[16,8], index: 1, kind: input, shape index: {}]   ;;  %s225_s2 = inlined_call_operand.vmem [shape: f32[1,8], index: 2, kind: input, shape index: {}]   ;;  %s226_s3 = inlined_call_operand.hbm [shape: f32[2,8], index: 3, kind: output, shape index: {}]  }
   0x1   :  { %v23_v0 = vld [vmem:[%s224_s1] sm:$0xff]  ;;  %v24_v1 = vld [vmem:[%s224_s1 + $0x8] sm:$0xff]  ;;  %141 = vmatprep.subr.bf16.mxu0 %v172_v2  ;;  %20 = vst.msk [vmem:[#allocation2] sm:$0x3] %vm19_vm0, %v173_v4  ;;  %138 = vmatprep.mubr.msk.f32.mxu0 %vm174_vm1, %v173_v4 }
   0x2   :  { %v142_v3 = vpack.c.bf16 %v24_v1, %v23_v0 }
   0x3   :  { %8 = vsyncpa [#allocation4], 0  ;;  %v22_v5 = vld [vmem:[%s223_s0] sm:$0x3]  ;;  %vm25_vm2 = vcmask 130048   ;;  %s175_s19 = smov [#allocation3]  }
   0x4   :  { %143 = vmatpush3.bf16.msra.mxu0 %v142_v3  ;;  %v130_v10 = vld [vmem:[%s225_s2] ss:$0 sm:$0xff]  ;;  %s121_s20 = sshll.u32 %s175_s19, 4  ;;  %s122_s20 = int_to_ptr.vmem [resolvable:$true] %s121_s20 }
   0x5   :  { %s148_s0 = scalar_lea.vmem %s122_s20, 32  ;;  %p153_p1 = scmp.lt.s32.totalorder %s122_s20, %s122_s20 }
   0x6   :  { %p149_p0 = scmp.ne.s32.totalorder %s122_s20, %s148_s0  ;;  %p154_p2 = scmp.lt.s32.totalorder %s148_s0, %s148_s0 }
   0x7   :  { %139 = vmatmul.mubr.msk.f32.vlgmr.msra.gmra.mrb[0].mxu0 %vm25_vm2, %v22_v5 }
   0x8   :  { %v21_v6 = vld [vmem:[#allocation2] sm:$0x3]  ;;  %p155_p3 = por %p154_p2, %p153_p1 }
   0xa   :  { %p156_p4 = pnand %p155_p3, %p149_p0 }
  0xda   :  { %v95_v7 = vpop.f32.mrb[0].mxu0 }
  0xdb   :  { %v99_v8 = vadd.f32 %v95_v7, %v21_v6  ;;  %v140_v9 = vpop.f32.mrb[1].mxu0 }
  0xdd   :  { %101 = vst.msk [vmem:[#allocation2] sm:$0x3] %vm19_vm0, %v99_v8 }
  0xe4   :  { %v105_v11 = vld [vmem:[#allocation2] sm:$0x3] }
  0xe5   :  { %v113_v12 = vadd.f32 %v130_v10, %v105_v11 }
  0xe7   :  { %114 = vst.msk [vmem:[#allocation3] sm:$0x3] %vm19_vm0, %v113_v12 }
  0xe8   :  { %159 = shalt.err (!%p156_p4)
}
  0xe9   :  { %s160_s23 = scalar_lea.hbm %s226_s3, 32 }
  0xea   :  { %p161_p5 = scmp.ne.s32.totalorder %s226_s3, %s160_s23  ;;  %p164_p6 = scmp.lt.u32.totalorder %s160_s23, %s226_s3 }
  0xec   :  { %p166_p7 = pnand %p164_p6, %p161_p5 }
  0xee   :  { %169 = shalt.err (!%p166_p7)
}
  0xef   :  { %124 = dma.vmem_to_hbm [thread:$0]  %s122_s20, 32, %s226_s3, [#allocation4]  }
  0xf0   :  { %170 = dma.done.wait [#allocation4], 32  }
  0xf1   :  { %171 = vsyncadd [#allocation4], 4294967264 }
  0xf2   :  { %128 = vsyncpa [#allocation4], 1 }

</bundles_post_ra>
